<compile_context>
chip_gen: v6e
topology: v6e:2x2x1
jax: 0.10.0
libtpu: 0.0.40
codegen_flags: <defaults>
</compile_context>

<pallas_src>
import functools

import numpy as np
import jax
import jax.numpy as jnp
from jax import lax
from jax.experimental import pallas as pl
from jax.experimental.pallas import tpu as pltpu


# ---------------------------------------------------------------------------
# Raw .view semantics of k = (z @ Wk^T + bk).view(b, heads, m, c):
#   k4[h, key=(g,u), ci] = z[h*mm + u, :] . Wk[g*c + ci, :] + bk[g*c + ci]
# (mm = m // heads).  Head h only needs the contiguous z block
# z[h*mm:(h+1)*mm] and the per-group weight blocks; softmax / weighted sums
# are permutation-invariant over the (g, u) key pairs, so any fixed key order
# (here g-major) is valid as long as K and V rows stay paired.
# ---------------------------------------------------------------------------
def _former2res_kernel(x2_ref, z_ref, wk_ref, bk_ref, wv_ref, bv_ref,
                       wo_ref, bo_ref, o_ref, k_buf, v_buf,
                       *, batch, heads, mm, scale):
    f32 = jnp.float32
    rhs_t = (((1,), (1,)), ((), ()))   # a @ b^T : contract last axis of both
    std = (((1,), (0,)), ((), ()))     # standard matmul

    # Hoisted attention scale: one small vmul instead of per-dot scaling.
    x2s = x2_ref[...] * scale          # (b, c, hw_blk)  -- hw on lanes (dense)

    z_all = z_ref[...]                 # (b, heads, mm, d)
    wk = wk_ref[...]                   # (heads, c, d)
    bk = bk_ref[...]                   # (heads, 1, c)
    wv = wv_ref[...]                   # (heads, c, d)
    bv = bv_ref[...]                   # (heads, 1, c)
    wo = wo_ref[...]                   # (heads, c_pad, c)   rows >= c are zero
    bo = bo_ref[...]                   # (c_pad, 1)
    c_pad = bo.shape[0]
    hw_blk = x2s.shape[-1]

    for bi in range(batch):            # batch / heads are small & static -> unrolled
        xq = x2s[bi]                   # (c, hw_blk)  scaled queries
        z_b = z_all[bi]                # (heads, mm, d)
        acc = jnp.zeros((c_pad, hw_blk), f32)

        for hh in range(heads):
            z_h = z_b[hh]              # (mm, d)

            # --- stacked K/V for head hh (tiny dots, then scratch assembly) ---
            for g in range(heads):
                k_g = lax.dot_general(z_h, wk[g], rhs_t,
                                      preferred_element_type=f32) + bk[g]   # (mm, c)
                v_g = lax.dot_general(z_h, wv[g], rhs_t,
                                      preferred_element_type=f32) + bv[g]   # (mm, c)
                k_buf[pl.ds(g * mm, mm), :] = k_g
                v_buf[pl.ds(g * mm, mm), :] = v_g
            K = k_buf[...]             # (m, c)  all keys of head hh
            V = v_buf[...]             # (m, c)

            # --- attention: keys on sublanes, hw on lanes (dense vregs) ---
            D = lax.dot_general(K, xq, std, preferred_element_type=f32)     # (m, hw_blk)
            mx = jnp.max(D, axis=0, keepdims=True)                          # (1, hw_blk)
            P = jnp.exp(D - mx)
            den = jnp.sum(P, axis=0, keepdims=True)                         # (1, hw_blk)

            # Fold the output projection per head: (Wo_h @ V^T) @ P
            woV = lax.dot_general(wo[hh], V, rhs_t,
                                  preferred_element_type=f32)               # (c_pad, m)
            num = lax.dot_general(woV, P, std,
                                  preferred_element_type=f32)               # (c_pad, hw_blk)

            acc = acc + num * pl.reciprocal(den, approx=False)              # exact

        # Lane-dense store: (c_pad, hw_blk) = whole vregs, unmasked vst.
        o_ref[bi] = (acc + bo).astype(o_ref.dtype)


# ---------------------------------------------------------------------------
# Wrapper: free row-major views, tiny weight repacking, one pallas_call.
# ---------------------------------------------------------------------------
def former2res(x, z, params, heads):
    b, c, h, w = x.shape
    _, m, d = z.shape
    if m % heads != 0:
        raise ValueError("former2res kernel requires heads to divide m")
    mm = m // heads
    hw = h * w
    c_pad = ((c + 7) // 8) * 8
    scale = float(c) ** -0.5
    f32 = jnp.float32

    # Free row-major views (no data movement).
    x2 = x.reshape(b, c, hw)               # hw on the lane axis inside the kernel
    z_r = z.reshape(b, heads, mm, d)       # per-head contiguous token blocks

    # Tiny one-time weight repacking so the kernel never reshapes lanes.
    wk_r = params["wk"].reshape(heads, c, d)
    wv_r = params["wv"].reshape(heads, c, d)
    bk_r = params["bk"].reshape(heads, 1, c)
    bv_r = params["bv"].reshape(heads, 1, c)
    wo_r = jnp.transpose(params["wo"].reshape(c, heads, c), (1, 0, 2))    # (heads, c, c)
    if c_pad > c:
        wo_r = jnp.concatenate(
            [wo_r, jnp.zeros((heads, c_pad - c, c), wo_r.dtype)], axis=1)
    bo_r = jnp.zeros((c_pad, 1), f32).at[:c, 0].set(params["bo"].astype(f32))

    # Grid: 2 "parallel" points over halves of hw (keeps both v7x TensorCores
    # busy); batch is handled inside the kernel so grid steps never scale with b.
    n_blk = 2 if (hw % 2 == 0 and (hw // 2) % 128 == 0) else 1
    hw_blk = hw // n_blk

    kernel = functools.partial(_former2res_kernel, batch=b, heads=heads,
                               mm=mm, scale=scale)
    out_t = pl.pallas_call(
        kernel,
        out_shape=jax.ShapeDtypeStruct((b, c_pad, hw), f32),
        grid=(n_blk,),
        in_specs=[
            pl.BlockSpec((b, c, hw_blk), lambda i: (0, 0, i)),
            pl.BlockSpec((b, heads, mm, d), lambda i: (0, 0, 0, 0)),
            pl.BlockSpec((heads, c, d), lambda i: (0, 0, 0)),
            pl.BlockSpec((heads, 1, c), lambda i: (0, 0, 0)),
            pl.BlockSpec((heads, c, d), lambda i: (0, 0, 0)),
            pl.BlockSpec((heads, 1, c), lambda i: (0, 0, 0)),
            pl.BlockSpec((heads, c_pad, c), lambda i: (0, 0, 0)),
            pl.BlockSpec((c_pad, 1), lambda i: (0, 0)),
        ],
        out_specs=pl.BlockSpec((b, c_pad, hw_blk), lambda i: (0, 0, i)),
        scratch_shapes=[pltpu.VMEM((m, c), f32),      # stacked K of one head
                        pltpu.VMEM((m, c), f32)],     # stacked V of one head
        compiler_params=pltpu.CompilerParams(dimension_semantics=("parallel",)),
    )(x2, z_r, wk_r, bk_r, wv_r, bv_r, wo_r, bo_r)

    # TODO(synk): nn.Dropout(p) skipped (identity at p=0.0 / eval mode).
    # The kernel returns the transposed projection (b, c_pad, hw); the ~8 KiB
    # transpose + raw `.view(b, c, h, w)` reinterpretation + residual add are
    # done here, where XLA fuses them, keeping the kernel stores lane-dense.
    out_blc = jnp.transpose(out_t[:, :c, :], (0, 2, 1))    # (b, hw, c) == torch `out`
    return x + out_blc.reshape(b, c, h, w)


# ---------------------------------------------------------------------------
# Pure-JAX reference (mirrors the PyTorch forward line by line)
# ---------------------------------------------------------------------------
def former2res_ref(x, z, params, heads):
    b, c, h, w = x.shape
    _, m, d = z.shape
    hp = lax.Precision.HIGHEST
    q = jnp.transpose(x.reshape(b, c, h * w), (0, 2, 1))                     # (b, hw, c)
    k = (jnp.einsum("bmd,ed->bme", z, params["wk"], precision=hp)
         + params["bk"]).reshape(b, heads, m, c)
    v = (jnp.einsum("bmd,ed->bme", z, params["wv"], precision=hp)
         + params["bv"]).reshape(b, heads, m, c)
    dots = jnp.einsum("blc,bhmc->bhlm", q, k, precision=hp) * (float(c) ** -0.5)
    attn = jax.nn.softmax(dots, axis=-1)
    out = jnp.einsum("bhlm,bhmc->bhlc", attn, v, precision=hp)
    out = jnp.transpose(out, (0, 2, 1, 3)).reshape(b, h * w, heads * c)
    out = jnp.einsum("blc,oc->blo", out, params["wo"], precision=hp) + params["bo"]
    out = out.reshape(b, c, h, w)
    return x + out


if __name__ == "__main__":
    key = jax.random.PRNGKey(0)
    b, c, h, w = 2, 4, 16, 16          # channel = 4
    m, d, heads = 8, 32, 2             # dim = 32, heads = 2 -> inner_dim = 8
    hc = heads * c

    ks = jax.random.split(key, 8)
    x = jax.random.normal(ks[0], (b, c, h, w), jnp.float32)
    z = jax.random.normal(ks[1], (b, m, d), jnp.float32)
    params = dict(
        wk=jax.random.normal(ks[2], (hc, d), jnp.float32) * 0.1,
        bk=jax.random.normal(ks[3], (hc,), jnp.float32) * 0.1,
        wv=jax.random.normal(ks[4], (hc, d), jnp.float32) * 0.1,
        bv=jax.random.normal(ks[5], (hc,), jnp.float32) * 0.1,
        wo=jax.random.normal(ks[6], (c, hc), jnp.float32) * 0.1,
        bo=jax.random.normal(ks[7], (c,), jnp.float32) * 0.1,
    )

    fwd = jax.jit(functools.partial(former2res, heads=heads))
    out = fwd(x, z, params)
    jax.block_until_ready(out)

    ref = former2res_ref(x, z, params, heads)
    np.testing.assert_allclose(np.asarray(out), np.asarray(ref),
                               rtol=1e-4, atol=1e-4)
    print("KERNEL_OK")
</pallas_src>

<mosaic_0001>
module attributes {stable_mosaic.version = 11 : i64} {
  func.func @_former2res_kernel(%arg0: i32, %arg1: memref<2x4x128xf32, #tpu.memory_space<vmem>>, %arg2: memref<2x2x4x32xf32, #tpu.memory_space<vmem>>, %arg3: memref<2x4x32xf32, #tpu.memory_space<vmem>>, %arg4: memref<2x1x4xf32, #tpu.memory_space<vmem>>, %arg5: memref<2x4x32xf32, #tpu.memory_space<vmem>>, %arg6: memref<2x1x4xf32, #tpu.memory_space<vmem>>, %arg7: memref<2x8x4xf32, #tpu.memory_space<vmem>>, %arg8: memref<8x1xf32, #tpu.memory_space<vmem>>, %arg9: memref<2x8x128xf32, #tpu.memory_space<vmem>>, %arg10: memref<8x4xf32, #tpu.memory_space<vmem>>, %arg11: memref<8x4xf32, #tpu.memory_space<vmem>>) attributes {dimension_semantics = [#tpu.dimension_semantics<parallel>], iteration_bounds = array<i64: 2>, scalar_prefetch = 0 : i64, scratch_operands = 2 : i64, tpu.core_type = #tpu.core_type<tc>, window_params = [{transform_indices = @transform_0, window_bounds = array<i64: 2, 4, 128>}, {pipeline_mode = #tpu.pipeline_mode<synchronous>, transform_indices = @transform_1, window_bounds = array<i64: 2, 2, 4, 32>}, {pipeline_mode = #tpu.pipeline_mode<synchronous>, transform_indices = @transform_2, window_bounds = array<i64: 2, 4, 32>}, {pipeline_mode = #tpu.pipeline_mode<synchronous>, transform_indices = @transform_3, window_bounds = array<i64: 2, 1, 4>}, {pipeline_mode = #tpu.pipeline_mode<synchronous>, transform_indices = @transform_4, window_bounds = array<i64: 2, 4, 32>}, {pipeline_mode = #tpu.pipeline_mode<synchronous>, transform_indices = @transform_5, window_bounds = array<i64: 2, 1, 4>}, {pipeline_mode = #tpu.pipeline_mode<synchronous>, transform_indices = @transform_6, window_bounds = array<i64: 2, 8, 4>}, {pipeline_mode = #tpu.pipeline_mode<synchronous>, transform_indices = @transform_7, window_bounds = array<i64: 8, 1>}, {transform_indices = @transform_8, window_bounds = array<i64: 2, 8, 128>}]} {
    %c0 = arith.constant 0 : index
    %c0_0 = arith.constant 0 : index
    %c0_1 = arith.constant 0 : index
    %0 = vector.load %arg1[%c0, %c0_0, %c0_1] : memref<2x4x128xf32, #tpu.memory_space<vmem>>, vector<2x4x128xf32>
    %cst = arith.constant 5.000000e-01 : f32
    %1 = vector.broadcast %cst : f32 to vector<2x4x128xf32>
    %2 = arith.mulf %0, %1 : vector<2x4x128xf32>
    %c0_2 = arith.constant 0 : index
    %c0_3 = arith.constant 0 : index
    %c0_4 = arith.constant 0 : index
    %c0_5 = arith.constant 0 : index
    %3 = vector.load %arg2[%c0_2, %c0_3, %c0_4, %c0_5] : memref<2x2x4x32xf32, #tpu.memory_space<vmem>>, vector<2x2x4x32xf32>
    %c0_6 = arith.constant 0 : index
    %c0_7 = arith.constant 0 : index
    %c0_8 = arith.constant 0 : index
    %4 = vector.load %arg3[%c0_6, %c0_7, %c0_8] : memref<2x4x32xf32, #tpu.memory_space<vmem>>, vector<2x4x32xf32>
    %c0_9 = arith.constant 0 : index
    %c0_10 = arith.constant 0 : index
    %c0_11 = arith.constant 0 : index
    %5 = vector.load %arg4[%c0_9, %c0_10, %c0_11] : memref<2x1x4xf32, #tpu.memory_space<vmem>>, vector<2x1x4xf32>
    %c0_12 = arith.constant 0 : index
    %c0_13 = arith.constant 0 : index
    %c0_14 = arith.constant 0 : index
    %6 = vector.load %arg5[%c0_12, %c0_13, %c0_14] : memref<2x4x32xf32, #tpu.memory_space<vmem>>, vector<2x4x32xf32>
    %c0_15 = arith.constant 0 : index
    %c0_16 = arith.constant 0 : index
    %c0_17 = arith.constant 0 : index
    %7 = vector.load %arg6[%c0_15, %c0_16, %c0_17] : memref<2x1x4xf32, #tpu.memory_space<vmem>>, vector<2x1x4xf32>
    %c0_18 = arith.constant 0 : index
    %c0_19 = arith.constant 0 : index
    %c0_20 = arith.constant 0 : index
    %8 = vector.load %arg7[%c0_18, %c0_19, %c0_20] : memref<2x8x4xf32, #tpu.memory_space<vmem>>, vector<2x8x4xf32>
    %c0_21 = arith.constant 0 : index
    %c0_22 = arith.constant 0 : index
    %9 = vector.load %arg8[%c0_21, %c0_22] : memref<8x1xf32, #tpu.memory_space<vmem>>, vector<8x1xf32>
    %10 = vector.extract_strided_slice %2 {offsets = [0, 0, 0], sizes = [1, 4, 128], strides = [1, 1, 1]} : vector<2x4x128xf32> to vector<1x4x128xf32>
    %11 = vector.shape_cast %10 : vector<1x4x128xf32> to vector<4x128xf32>
    %12 = vector.extract_strided_slice %3 {offsets = [0, 0, 0, 0], sizes = [1, 2, 4, 32], strides = [1, 1, 1, 1]} : vector<2x2x4x32xf32> to vector<1x2x4x32xf32>
    %13 = vector.shape_cast %12 : vector<1x2x4x32xf32> to vector<2x4x32xf32>
    %cst_23 = arith.constant 0.000000e+00 : f32
    %14 = vector.broadcast %cst_23 : f32 to vector<8x128xf32>
    %15 = vector.extract_strided_slice %13 {offsets = [0, 0, 0], sizes = [1, 4, 32], strides = [1, 1, 1]} : vector<2x4x32xf32> to vector<1x4x32xf32>
    %16 = vector.shape_cast %15 : vector<1x4x32xf32> to vector<4x32xf32>
    %17 = vector.extract_strided_slice %4 {offsets = [0, 0, 0], sizes = [1, 4, 32], strides = [1, 1, 1]} : vector<2x4x32xf32> to vector<1x4x32xf32>
    %18 = vector.shape_cast %17 : vector<1x4x32xf32> to vector<4x32xf32>
    %cst_24 = arith.constant dense<0.000000e+00> : vector<4x4xf32>
    %19 = tpu.matmul %16, %18, %cst_24 {dimension_numbers = #tpu.dot_dimension_numbers<[1], [1], [0], [0], [0, 0, 1, 0], [], []>} : vector<4x32xf32>, vector<4x32xf32>, vector<4x4xf32> -> vector<4x4xf32>
    %20 = vector.extract_strided_slice %5 {offsets = [0, 0, 0], sizes = [1, 1, 4], strides = [1, 1, 1]} : vector<2x1x4xf32> to vector<1x1x4xf32>
    %21 = vector.shape_cast %20 : vector<1x1x4xf32> to vector<1x4xf32>
    %22 = vector.broadcast %21 : vector<1x4xf32> to vector<4x4xf32>
    %23 = arith.addf %19, %22 : vector<4x4xf32>
    %24 = vector.extract_strided_slice %6 {offsets = [0, 0, 0], sizes = [1, 4, 32], strides = [1, 1, 1]} : vector<2x4x32xf32> to vector<1x4x32xf32>
    %25 = vector.shape_cast %24 : vector<1x4x32xf32> to vector<4x32xf32>
    %cst_25 = arith.constant dense<0.000000e+00> : vector<4x4xf32>
    %26 = tpu.matmul %16, %25, %cst_25 {dimension_numbers = #tpu.dot_dimension_numbers<[1], [1], [0], [0], [0, 0, 1, 0], [], []>} : vector<4x32xf32>, vector<4x32xf32>, vector<4x4xf32> -> vector<4x4xf32>
    %27 = vector.extract_strided_slice %7 {offsets = [0, 0, 0], sizes = [1, 1, 4], strides = [1, 1, 1]} : vector<2x1x4xf32> to vector<1x1x4xf32>
    %28 = vector.shape_cast %27 : vector<1x1x4xf32> to vector<1x4xf32>
    %29 = vector.broadcast %28 : vector<1x4xf32> to vector<4x4xf32>
    %30 = arith.addf %26, %29 : vector<4x4xf32>
    %c0_26 = arith.constant 0 : index
    %c0_27 = arith.constant 0 : index
    %31 = vector.load %arg10[%c0_26, %c0_27] : memref<8x4xf32, #tpu.memory_space<vmem>>, vector<4x4xf32>
    tpu.vector_store %arg10[%c0_26, %c0_27], %23 {strides = array<i32>} : memref<8x4xf32, #tpu.memory_space<vmem>>, vector<4x4xf32>,
    %c0_28 = arith.constant 0 : index
    %c0_29 = arith.constant 0 : index
    %32 = vector.load %arg11[%c0_28, %c0_29] : memref<8x4xf32, #tpu.memory_space<vmem>>, vector<4x4xf32>
    tpu.vector_store %arg11[%c0_28, %c0_29], %30 {strides = array<i32>} : memref<8x4xf32, #tpu.memory_space<vmem>>, vector<4x4xf32>,
    %33 = vector.extract_strided_slice %4 {offsets = [1, 0, 0], sizes = [1, 4, 32], strides = [1, 1, 1]} : vector<2x4x32xf32> to vector<1x4x32xf32>
    %34 = vector.shape_cast %33 : vector<1x4x32xf32> to vector<4x32xf32>
    %cst_30 = arith.constant dense<0.000000e+00> : vector<4x4xf32>
    %35 = tpu.matmul %16, %34, %cst_30 {dimension_numbers = #tpu.dot_dimension_numbers<[1], [1], [0], [0], [0, 0, 1, 0], [], []>} : vector<4x32xf32>, vector<4x32xf32>, vector<4x4xf32> -> vector<4x4xf32>
    %36 = vector.extract_strided_slice %5 {offsets = [1, 0, 0], sizes = [1, 1, 4], strides = [1, 1, 1]} : vector<2x1x4xf32> to vector<1x1x4xf32>
    %37 = vector.shape_cast %36 : vector<1x1x4xf32> to vector<1x4xf32>
    %38 = vector.broadcast %37 : vector<1x4xf32> to vector<4x4xf32>
    %39 = arith.addf %35, %38 : vector<4x4xf32>
    %40 = vector.extract_strided_slice %6 {offsets = [1, 0, 0], sizes = [1, 4, 32], strides = [1, 1, 1]} : vector<2x4x32xf32> to vector<1x4x32xf32>
    %41 = vector.shape_cast %40 : vector<1x4x32xf32> to vector<4x32xf32>
    %cst_31 = arith.constant dense<0.000000e+00> : vector<4x4xf32>
    %42 = tpu.matmul %16, %41, %cst_31 {dimension_numbers = #tpu.dot_dimension_numbers<[1], [1], [0], [0], [0, 0, 1, 0], [], []>} : vector<4x32xf32>, vector<4x32xf32>, vector<4x4xf32> -> vector<4x4xf32>
    %43 = vector.extract_strided_slice %7 {offsets = [1, 0, 0], sizes = [1, 1, 4], strides = [1, 1, 1]} : vector<2x1x4xf32> to vector<1x1x4xf32>
    %44 = vector.shape_cast %43 : vector<1x1x4xf32> to vector<1x4xf32>
    %45 = vector.broadcast %44 : vector<1x4xf32> to vector<4x4xf32>
    %46 = arith.addf %42, %45 : vector<4x4xf32>
    %c4 = arith.constant 4 : index
    %c0_32 = arith.constant 0 : index
    %47 = vector.load %arg10[%c4, %c0_32] : memref<8x4xf32, #tpu.memory_space<vmem>>, vector<4x4xf32>
    tpu.vector_store %arg10[%c4, %c0_32], %39 {strides = array<i32>} : memref<8x4xf32, #tpu.memory_space<vmem>>, vector<4x4xf32>,
    %c4_33 = arith.constant 4 : index
    %c0_34 = arith.constant 0 : index
    %48 = vector.load %arg11[%c4_33, %c0_34] : memref<8x4xf32, #tpu.memory_space<vmem>>, vector<4x4xf32>
    tpu.vector_store %arg11[%c4_33, %c0_34], %46 {strides = array<i32>} : memref<8x4xf32, #tpu.memory_space<vmem>>, vector<4x4xf32>,
    %c0_35 = arith.constant 0 : index
    %c0_36 = arith.constant 0 : index
    %49 = vector.load %arg10[%c0_35, %c0_36] : memref<8x4xf32, #tpu.memory_space<vmem>>, vector<8x4xf32>
    %c0_37 = arith.constant 0 : index
    %c0_38 = arith.constant 0 : index
    %50 = vector.load %arg11[%c0_37, %c0_38] : memref<8x4xf32, #tpu.memory_space<vmem>>, vector<8x4xf32>
    %cst_39 = arith.constant dense<0.000000e+00> : vector<8x128xf32>
    %51 = tpu.matmul %49, %11, %cst_39 {dimension_numbers = #tpu.dot_dimension_numbers<[1], [0], [0], [1], [0, 0, 1, 1], [], []>} : vector<8x4xf32>, vector<4x128xf32>, vector<8x128xf32> -> vector<8x128xf32>
    %cst_40 = arith.constant dense<0xFF800000> : vector<128xf32>
    %52 = vector.multi_reduction <maximumf>, %51, %cst_40 [0] : vector<8x128xf32> to vector<128xf32>
    %53 = vector.shape_cast %52 : vector<128xf32> to vector<1x128xf32>
    %54 = vector.broadcast %53 : vector<1x128xf32> to vector<8x128xf32>
    %55 = arith.subf %51, %54 : vector<8x128xf32>
    %56 = math.exp %55 : vector<8x128xf32>
    %cst_41 = arith.constant dense<0.000000e+00> : vector<128xf32>
    %57 = vector.multi_reduction <add>, %56, %cst_41 [0] : vector<8x128xf32> to vector<128xf32>
    %58 = vector.shape_cast %57 : vector<128xf32> to vector<1x128xf32>
    %59 = vector.extract_strided_slice %8 {offsets = [0, 0, 0], sizes = [1, 8, 4], strides = [1, 1, 1]} : vector<2x8x4xf32> to vector<1x8x4xf32>
    %60 = vector.shape_cast %59 : vector<1x8x4xf32> to vector<8x4xf32>
    %cst_42 = arith.constant dense<0.000000e+00> : vector<8x8xf32>
    %61 = tpu.matmul %60, %50, %cst_42 {dimension_numbers = #tpu.dot_dimension_numbers<[1], [1], [0], [0], [0, 0, 1, 0], [], []>} : vector<8x4xf32>, vector<8x4xf32>, vector<8x8xf32> -> vector<8x8xf32>
    %cst_43 = arith.constant dense<0.000000e+00> : vector<8x128xf32>
    %62 = tpu.matmul %61, %56, %cst_43 {dimension_numbers = #tpu.dot_dimension_numbers<[1], [0], [0], [1], [0, 0, 1, 1], [], []>} : vector<8x8xf32>, vector<8x128xf32>, vector<8x128xf32> -> vector<8x128xf32>
    %63 = tpu.reciprocal %58 : vector<1x128xf32> -> vector<1x128xf32>
    %64 = vector.broadcast %63 : vector<1x128xf32> to vector<8x128xf32>
    %65 = arith.mulf %62, %64 : vector<8x128xf32>
    %66 = arith.addf %14, %65 : vector<8x128xf32>
    %67 = vector.extract_strided_slice %13 {offsets = [1, 0, 0], sizes = [1, 4, 32], strides = [1, 1, 1]} : vector<2x4x32xf32> to vector<1x4x32xf32>
    %68 = vector.shape_cast %67 : vector<1x4x32xf32> to vector<4x32xf32>
    %69 = vector.extract_strided_slice %4 {offsets = [0, 0, 0], sizes = [1, 4, 32], strides = [1, 1, 1]} : vector<2x4x32xf32> to vector<1x4x32xf32>
    %70 = vector.shape_cast %69 : vector<1x4x32xf32> to vector<4x32xf32>
    %cst_44 = arith.constant dense<0.000000e+00> : vector<4x4xf32>
    %71 = tpu.matmul %68, %70, %cst_44 {dimension_numbers = #tpu.dot_dimension_numbers<[1], [1], [0], [0], [0, 0, 1, 0], [], []>} : vector<4x32xf32>, vector<4x32xf32>, vector<4x4xf32> -> vector<4x4xf32>
    %72 = vector.extract_strided_slice %5 {offsets = [0, 0, 0], sizes = [1, 1, 4], strides = [1, 1, 1]} : vector<2x1x4xf32> to vector<1x1x4xf32>
    %73 = vector.shape_cast %72 : vector<1x1x4xf32> to vector<1x4xf32>
    %74 = vector.broadcast %73 : vector<1x4xf32> to vector<4x4xf32>
    %75 = arith.addf %71, %74 : vector<4x4xf32>
    %76 = vector.extract_strided_slice %6 {offsets = [0, 0, 0], sizes = [1, 4, 32], strides = [1, 1, 1]} : vector<2x4x32xf32> to vector<1x4x32xf32>
    %77 = vector.shape_cast %76 : vector<1x4x32xf32> to vector<4x32xf32>
    %cst_45 = arith.constant dense<0.000000e+00> : vector<4x4xf32>
    %78 = tpu.matmul %68, %77, %cst_45 {dimension_numbers = #tpu.dot_dimension_numbers<[1], [1], [0], [0], [0, 0, 1, 0], [], []>} : vector<4x32xf32>, vector<4x32xf32>, vector<4x4xf32> -> vector<4x4xf32>
    %79 = vector.extract_strided_slice %7 {offsets = [0, 0, 0], sizes = [1, 1, 4], strides = [1, 1, 1]} : vector<2x1x4xf32> to vector<1x1x4xf32>
    %80 = vector.shape_cast %79 : vector<1x1x4xf32> to vector<1x4xf32>
    %81 = vector.broadcast %80 : vector<1x4xf32> to vector<4x4xf32>
    %82 = arith.addf %78, %81 : vector<4x4xf32>
    %c0_46 = arith.constant 0 : index
    %c0_47 = arith.constant 0 : index
    %83 = vector.load %arg10[%c0_46, %c0_47] : memref<8x4xf32, #tpu.memory_space<vmem>>, vector<4x4xf32>
    tpu.vector_store %arg10[%c0_46, %c0_47], %75 {strides = array<i32>} : memref<8x4xf32, #tpu.memory_space<vmem>>, vector<4x4xf32>,
    %c0_48 = arith.constant 0 : index
    %c0_49 = arith.constant 0 : index
    %84 = vector.load %arg11[%c0_48, %c0_49] : memref<8x4xf32, #tpu.memory_space<vmem>>, vector<4x4xf32>
    tpu.vector_store %arg11[%c0_48, %c0_49], %82 {strides = array<i32>} : memref<8x4xf32, #tpu.memory_space<vmem>>, vector<4x4xf32>,
    %85 = vector.extract_strided_slice %4 {offsets = [1, 0, 0], sizes = [1, 4, 32], strides = [1, 1, 1]} : vector<2x4x32xf32> to vector<1x4x32xf32>
    %86 = vector.shape_cast %85 : vector<1x4x32xf32> to vector<4x32xf32>
    %cst_50 = arith.constant dense<0.000000e+00> : vector<4x4xf32>
    %87 = tpu.matmul %68, %86, %cst_50 {dimension_numbers = #tpu.dot_dimension_numbers<[1], [1], [0], [0], [0, 0, 1, 0], [], []>} : vector<4x32xf32>, vector<4x32xf32>, vector<4x4xf32> -> vector<4x4xf32>
    %88 = vector.extract_strided_slice %5 {offsets = [1, 0, 0], sizes = [1, 1, 4], strides = [1, 1, 1]} : vector<2x1x4xf32> to vector<1x1x4xf32>
    %89 = vector.shape_cast %88 : vector<1x1x4xf32> to vector<1x4xf32>
    %90 = vector.broadcast %89 : vector<1x4xf32> to vector<4x4xf32>
    %91 = arith.addf %87, %90 : vector<4x4xf32>
    %92 = vector.extract_strided_slice %6 {offsets = [1, 0, 0], sizes = [1, 4, 32], strides = [1, 1, 1]} : vector<2x4x32xf32> to vector<1x4x32xf32>
    %93 = vector.shape_cast %92 : vector<1x4x32xf32> to vector<4x32xf32>
    %cst_51 = arith.constant dense<0.000000e+00> : vector<4x4xf32>
    %94 = tpu.matmul %68, %93, %cst_51 {dimension_numbers = #tpu.dot_dimension_numbers<[1], [1], [0], [0], [0, 0, 1, 0], [], []>} : vector<4x32xf32>, vector<4x32xf32>, vector<4x4xf32> -> vector<4x4xf32>
    %95 = vector.extract_strided_slice %7 {offsets = [1, 0, 0], sizes = [1, 1, 4], strides = [1, 1, 1]} : vector<2x1x4xf32> to vector<1x1x4xf32>
    %96 = vector.shape_cast %95 : vector<1x1x4xf32> to vector<1x4xf32>
    %97 = vector.broadcast %96 : vector<1x4xf32> to vector<4x4xf32>
    %98 = arith.addf %94, %97 : vector<4x4xf32>
    %c4_52 = arith.constant 4 : index
    %c0_53 = arith.constant 0 : index
    %99 = vector.load %arg10[%c4_52, %c0_53] : memref<8x4xf32, #tpu.memory_space<vmem>>, vector<4x4xf32>
    tpu.vector_store %arg10[%c4_52, %c0_53], %91 {strides = array<i32>} : memref<8x4xf32, #tpu.memory_space<vmem>>, vector<4x4xf32>,
    %c4_54 = arith.constant 4 : index
    %c0_55 = arith.constant 0 : index
    %100 = vector.load %arg11[%c4_54, %c0_55] : memref<8x4xf32, #tpu.memory_space<vmem>>, vector<4x4xf32>
    tpu.vector_store %arg11[%c4_54, %c0_55], %98 {strides = array<i32>} : memref<8x4xf32, #tpu.memory_space<vmem>>, vector<4x4xf32>,
    %c0_56 = arith.constant 0 : index
    %c0_57 = arith.constant 0 : index
    %101 = vector.load %arg10[%c0_56, %c0_57] : memref<8x4xf32, #tpu.memory_space<vmem>>, vector<8x4xf32>
    %c0_58 = arith.constant 0 : index
    %c0_59 = arith.constant 0 : index
    %102 = vector.load %arg11[%c0_58, %c0_59] : memref<8x4xf32, #tpu.memory_space<vmem>>, vector<8x4xf32>
    %cst_60 = arith.constant dense<0.000000e+00> : vector<8x128xf32>
    %103 = tpu.matmul %101, %11, %cst_60 {dimension_numbers = #tpu.dot_dimension_numbers<[1], [0], [0], [1], [0, 0, 1, 1], [], []>} : vector<8x4xf32>, vector<4x128xf32>, vector<8x128xf32> -> vector<8x128xf32>
    %cst_61 = arith.constant dense<0xFF800000> : vector<128xf32>
    %104 = vector.multi_reduction <maximumf>, %103, %cst_61 [0] : vector<8x128xf32> to vector<128xf32>
    %105 = vector.shape_cast %104 : vector<128xf32> to vector<1x128xf32>
    %106 = vector.broadcast %105 : vector<1x128xf32> to vector<8x128xf32>
    %107 = arith.subf %103, %106 : vector<8x128xf32>
    %108 = math.exp %107 : vector<8x128xf32>
    %cst_62 = arith.constant dense<0.000000e+00> : vector<128xf32>
    %109 = vector.multi_reduction <add>, %108, %cst_62 [0] : vector<8x128xf32> to vector<128xf32>
    %110 = vector.shape_cast %109 : vector<128xf32> to vector<1x128xf32>
    %111 = vector.extract_strided_slice %8 {offsets = [1, 0, 0], sizes = [1, 8, 4], strides = [1, 1, 1]} : vector<2x8x4xf32> to vector<1x8x4xf32>
    %112 = vector.shape_cast %111 : vector<1x8x4xf32> to vector<8x4xf32>
    %cst_63 = arith.constant dense<0.000000e+00> : vector<8x8xf32>
    %113 = tpu.matmul %112, %102, %cst_63 {dimension_numbers = #tpu.dot_dimension_numbers<[1], [1], [0], [0], [0, 0, 1, 0], [], []>} : vector<8x4xf32>, vector<8x4xf32>, vector<8x8xf32> -> vector<8x8xf32>
    %cst_64 = arith.constant dense<0.000000e+00> : vector<8x128xf32>
    %114 = tpu.matmul %113, %108, %cst_64 {dimension_numbers = #tpu.dot_dimension_numbers<[1], [0], [0], [1], [0, 0, 1, 1], [], []>} : vector<8x8xf32>, vector<8x128xf32>, vector<8x128xf32> -> vector<8x128xf32>
    %115 = tpu.reciprocal %110 : vector<1x128xf32> -> vector<1x128xf32>
    %116 = vector.broadcast %115 : vector<1x128xf32> to vector<8x128xf32>
    %117 = arith.mulf %114, %116 : vector<8x128xf32>
    %118 = arith.addf %66, %117 : vector<8x128xf32>
    %119 = vector.broadcast %9 : vector<8x1xf32> to vector<8x128xf32>
    %120 = arith.addf %118, %119 : vector<8x128xf32>
    %c0_65 = arith.constant 0 : index
    %c0_66 = arith.constant 0 : index
    %c0_67 = arith.constant 0 : index
    %121 = vector.load %arg9[%c0_65, %c0_66, %c0_67] : memref<2x8x128xf32, #tpu.memory_space<vmem>>, vector<1x8x128xf32>
    %122 = vector.shape_cast %121 : vector<1x8x128xf32> to vector<8x128xf32>
    %123 = vector.shape_cast %120 : vector<8x128xf32> to vector<1x8x128xf32>
    tpu.vector_store %arg9[%c0_65, %c0_66, %c0_67], %123 {strides = array<i32>} : memref<2x8x128xf32, #tpu.memory_space<vmem>>, vector<1x8x128xf32>,
    %124 = vector.extract_strided_slice %2 {offsets = [1, 0, 0], sizes = [1, 4, 128], strides = [1, 1, 1]} : vector<2x4x128xf32> to vector<1x4x128xf32>
    %125 = vector.shape_cast %124 : vector<1x4x128xf32> to vector<4x128xf32>
    %126 = vector.extract_strided_slice %3 {offsets = [1, 0, 0, 0], sizes = [1, 2, 4, 32], strides = [1, 1, 1, 1]} : vector<2x2x4x32xf32> to vector<1x2x4x32xf32>
    %127 = vector.shape_cast %126 : vector<1x2x4x32xf32> to vector<2x4x32xf32>
    %cst_68 = arith.constant 0.000000e+00 : f32
    %128 = vector.broadcast %cst_68 : f32 to vector<8x128xf32>
    %129 = vector.extract_strided_slice %127 {offsets = [0, 0, 0], sizes = [1, 4, 32], strides = [1, 1, 1]} : vector<2x4x32xf32> to vector<1x4x32xf32>
    %130 = vector.shape_cast %129 : vector<1x4x32xf32> to vector<4x32xf32>
    %131 = vector.extract_strided_slice %4 {offsets = [0, 0, 0], sizes = [1, 4, 32], strides = [1, 1, 1]} : vector<2x4x32xf32> to vector<1x4x32xf32>
    %132 = vector.shape_cast %131 : vector<1x4x32xf32> to vector<4x32xf32>
    %cst_69 = arith.constant dense<0.000000e+00> : vector<4x4xf32>
    %133 = tpu.matmul %130, %132, %cst_69 {dimension_numbers = #tpu.dot_dimension_numbers<[1], [1], [0], [0], [0, 0, 1, 0], [], []>} : vector<4x32xf32>, vector<4x32xf32>, vector<4x4xf32> -> vector<4x4xf32>
    %134 = vector.extract_strided_slice %5 {offsets = [0, 0, 0], sizes = [1, 1, 4], strides = [1, 1, 1]} : vector<2x1x4xf32> to vector<1x1x4xf32>
    %135 = vector.shape_cast %134 : vector<1x1x4xf32> to vector<1x4xf32>
    %136 = vector.broadcast %135 : vector<1x4xf32> to vector<4x4xf32>
    %137 = arith.addf %133, %136 : vector<4x4xf32>
    %138 = vector.extract_strided_slice %6 {offsets = [0, 0, 0], sizes = [1, 4, 32], strides = [1, 1, 1]} : vector<2x4x32xf32> to vector<1x4x32xf32>
    %139 = vector.shape_cast %138 : vector<1x4x32xf32> to vector<4x32xf32>
    %cst_70 = arith.constant dense<0.000000e+00> : vector<4x4xf32>
    %140 = tpu.matmul %130, %139, %cst_70 {dimension_numbers = #tpu.dot_dimension_numbers<[1], [1], [0], [0], [0, 0, 1, 0], [], []>} : vector<4x32xf32>, vector<4x32xf32>, vector<4x4xf32> -> vector<4x4xf32>
    %141 = vector.extract_strided_slice %7 {offsets = [0, 0, 0], sizes = [1, 1, 4], strides = [1, 1, 1]} : vector<2x1x4xf32> to vector<1x1x4xf32>
    %142 = vector.shape_cast %141 : vector<1x1x4xf32> to vector<1x4xf32>
    %143 = vector.broadcast %142 : vector<1x4xf32> to vector<4x4xf32>
    %144 = arith.addf %140, %143 : vector<4x4xf32>
    %c0_71 = arith.constant 0 : index
    %c0_72 = arith.constant 0 : index
    %145 = vector.load %arg10[%c0_71, %c0_72] : memref<8x4xf32, #tpu.memory_space<vmem>>, vector<4x4xf32>
    tpu.vector_store %arg10[%c0_71, %c0_72], %137 {strides = array<i32>} : memref<8x4xf32, #tpu.memory_space<vmem>>, vector<4x4xf32>,
    %c0_73 = arith.constant 0 : index
    %c0_74 = arith.constant 0 : index
    %146 = vector.load %arg11[%c0_73, %c0_74] : memref<8x4xf32, #tpu.memory_space<vmem>>, vector<4x4xf32>
    tpu.vector_store %arg11[%c0_73, %c0_74], %144 {strides = array<i32>} : memref<8x4xf32, #tpu.memory_space<vmem>>, vector<4x4xf32>,
    %147 = vector.extract_strided_slice %4 {offsets = [1, 0, 0], sizes = [1, 4, 32], strides = [1, 1, 1]} : vector<2x4x32xf32> to vector<1x4x32xf32>
    %148 = vector.shape_cast %147 : vector<1x4x32xf32> to vector<4x32xf32>
    %cst_75 = arith.constant dense<0.000000e+00> : vector<4x4xf32>
    %149 = tpu.matmul %130, %148, %cst_75 {dimension_numbers = #tpu.dot_dimension_numbers<[1], [1], [0], [0], [0, 0, 1, 0], [], []>} : vector<4x32xf32>, vector<4x32xf32>, vector<4x4xf32> -> vector<4x4xf32>
    %150 = vector.extract_strided_slice %5 {offsets = [1, 0, 0], sizes = [1, 1, 4], strides = [1, 1, 1]} : vector<2x1x4xf32> to vector<1x1x4xf32>
    %151 = vector.shape_cast %150 : vector<1x1x4xf32> to vector<1x4xf32>
    %152 = vector.broadcast %151 : vector<1x4xf32> to vector<4x4xf32>
    %153 = arith.addf %149, %152 : vector<4x4xf32>
    %154 = vector.extract_strided_slice %6 {offsets = [1, 0, 0], sizes = [1, 4, 32], strides = [1, 1, 1]} : vector<2x4x32xf32> to vector<1x4x32xf32>
    %155 = vector.shape_cast %154 : vector<1x4x32xf32> to vector<4x32xf32>
    %cst_76 = arith.constant dense<0.000000e+00> : vector<4x4xf32>
    %156 = tpu.matmul %130, %155, %cst_76 {dimension_numbers = #tpu.dot_dimension_numbers<[1], [1], [0], [0], [0, 0, 1, 0], [], []>} : vector<4x32xf32>, vector<4x32xf32>, vector<4x4xf32> -> vector<4x4xf32>
    %157 = vector.extract_strided_slice %7 {offsets = [1, 0, 0], sizes = [1, 1, 4], strides = [1, 1, 1]} : vector<2x1x4xf32> to vector<1x1x4xf32>
    %158 = vector.shape_cast %157 : vector<1x1x4xf32> to vector<1x4xf32>
    %159 = vector.broadcast %158 : vector<1x4xf32> to vector<4x4xf32>
    %160 = arith.addf %156, %159 : vector<4x4xf32>
    %c4_77 = arith.constant 4 : index
    %c0_78 = arith.constant 0 : index
    %161 = vector.load %arg10[%c4_77, %c0_78] : memref<8x4xf32, #tpu.memory_space<vmem>>, vector<4x4xf32>
    tpu.vector_store %arg10[%c4_77, %c0_78], %153 {strides = array<i32>} : memref<8x4xf32, #tpu.memory_space<vmem>>, vector<4x4xf32>,
    %c4_79 = arith.constant 4 : index
    %c0_80 = arith.constant 0 : index
    %162 = vector.load %arg11[%c4_79, %c0_80] : memref<8x4xf32, #tpu.memory_space<vmem>>, vector<4x4xf32>
    tpu.vector_store %arg11[%c4_79, %c0_80], %160 {strides = array<i32>} : memref<8x4xf32, #tpu.memory_space<vmem>>, vector<4x4xf32>,
    %c0_81 = arith.constant 0 : index
    %c0_82 = arith.constant 0 : index
    %163 = vector.load %arg10[%c0_81, %c0_82] : memref<8x4xf32, #tpu.memory_space<vmem>>, vector<8x4xf32>
    %c0_83 = arith.constant 0 : index
    %c0_84 = arith.constant 0 : index
    %164 = vector.load %arg11[%c0_83, %c0_84] : memref<8x4xf32, #tpu.memory_space<vmem>>, vector<8x4xf32>
    %cst_85 = arith.constant dense<0.000000e+00> : vector<8x128xf32>
    %165 = tpu.matmul %163, %125, %cst_85 {dimension_numbers = #tpu.dot_dimension_numbers<[1], [0], [0], [1], [0, 0, 1, 1], [], []>} : vector<8x4xf32>, vector<4x128xf32>, vector<8x128xf32> -> vector<8x128xf32>
    %cst_86 = arith.constant dense<0xFF800000> : vector<128xf32>
    %166 = vector.multi_reduction <maximumf>, %165, %cst_86 [0] : vector<8x128xf32> to vector<128xf32>
    %167 = vector.shape_cast %166 : vector<128xf32> to vector<1x128xf32>
    %168 = vector.broadcast %167 : vector<1x128xf32> to vector<8x128xf32>
    %169 = arith.subf %165, %168 : vector<8x128xf32>
    %170 = math.exp %169 : vector<8x128xf32>
    %cst_87 = arith.constant dense<0.000000e+00> : vector<128xf32>
    %171 = vector.multi_reduction <add>, %170, %cst_87 [0] : vector<8x128xf32> to vector<128xf32>
    %172 = vector.shape_cast %171 : vector<128xf32> to vector<1x128xf32>
    %173 = vector.extract_strided_slice %8 {offsets = [0, 0, 0], sizes = [1, 8, 4], strides = [1, 1, 1]} : vector<2x8x4xf32> to vector<1x8x4xf32>
    %174 = vector.shape_cast %173 : vector<1x8x4xf32> to vector<8x4xf32>
    %cst_88 = arith.constant dense<0.000000e+00> : vector<8x8xf32>
    %175 = tpu.matmul %174, %164, %cst_88 {dimension_numbers = #tpu.dot_dimension_numbers<[1], [1], [0], [0], [0, 0, 1, 0], [], []>} : vector<8x4xf32>, vector<8x4xf32>, vector<8x8xf32> -> vector<8x8xf32>
    %cst_89 = arith.constant dense<0.000000e+00> : vector<8x128xf32>
    %176 = tpu.matmul %175, %170, %cst_89 {dimension_numbers = #tpu.dot_dimension_numbers<[1], [0], [0], [1], [0, 0, 1, 1], [], []>} : vector<8x8xf32>, vector<8x128xf32>, vector<8x128xf32> -> vector<8x128xf32>
    %177 = tpu.reciprocal %172 : vector<1x128xf32> -> vector<1x128xf32>
    %178 = vector.broadcast %177 : vector<1x128xf32> to vector<8x128xf32>
    %179 = arith.mulf %176, %178 : vector<8x128xf32>
    %180 = arith.addf %128, %179 : vector<8x128xf32>
    %181 = vector.extract_strided_slice %127 {offsets = [1, 0, 0], sizes = [1, 4, 32], strides = [1, 1, 1]} : vector<2x4x32xf32> to vector<1x4x32xf32>
    %182 = vector.shape_cast %181 : vector<1x4x32xf32> to vector<4x32xf32>
    %183 = vector.extract_strided_slice %4 {offsets = [0, 0, 0], sizes = [1, 4, 32], strides = [1, 1, 1]} : vector<2x4x32xf32> to vector<1x4x32xf32>
    %184 = vector.shape_cast %183 : vector<1x4x32xf32> to vector<4x32xf32>
    %cst_90 = arith.constant dense<0.000000e+00> : vector<4x4xf32>
    %185 = tpu.matmul %182, %184, %cst_90 {dimension_numbers = #tpu.dot_dimension_numbers<[1], [1], [0], [0], [0, 0, 1, 0], [], []>} : vector<4x32xf32>, vector<4x32xf32>, vector<4x4xf32> -> vector<4x4xf32>
    %186 = vector.extract_strided_slice %5 {offsets = [0, 0, 0], sizes = [1, 1, 4], strides = [1, 1, 1]} : vector<2x1x4xf32> to vector<1x1x4xf32>
    %187 = vector.shape_cast %186 : vector<1x1x4xf32> to vector<1x4xf32>
    %188 = vector.broadcast %187 : vector<1x4xf32> to vector<4x4xf32>
    %189 = arith.addf %185, %188 : vector<4x4xf32>
    %190 = vector.extract_strided_slice %6 {offsets = [0, 0, 0], sizes = [1, 4, 32], strides = [1, 1, 1]} : vector<2x4x32xf32> to vector<1x4x32xf32>
    %191 = vector.shape_cast %190 : vector<1x4x32xf32> to vector<4x32xf32>
    %cst_91 = arith.constant dense<0.000000e+00> : vector<4x4xf32>
    %192 = tpu.matmul %182, %191, %cst_91 {dimension_numbers = #tpu.dot_dimension_numbers<[1], [1], [0], [0], [0, 0, 1, 0], [], []>} : vector<4x32xf32>, vector<4x32xf32>, vector<4x4xf32> -> vector<4x4xf32>
    %193 = vector.extract_strided_slice %7 {offsets = [0, 0, 0], sizes = [1, 1, 4], strides = [1, 1, 1]} : vector<2x1x4xf32> to vector<1x1x4xf32>
    %194 = vector.shape_cast %193 : vector<1x1x4xf32> to vector<1x4xf32>
    %195 = vector.broadcast %194 : vector<1x4xf32> to vector<4x4xf32>
    %196 = arith.addf %192, %195 : vector<4x4xf32>
    %c0_92 = arith.constant 0 : index
    %c0_93 = arith.constant 0 : index
    %197 = vector.load %arg10[%c0_92, %c0_93] : memref<8x4xf32, #tpu.memory_space<vmem>>, vector<4x4xf32>
    tpu.vector_store %arg10[%c0_92, %c0_93], %189 {strides = array<i32>} : memref<8x4xf32, #tpu.memory_space<vmem>>, vector<4x4xf32>,
    %c0_94 = arith.constant 0 : index
    %c0_95 = arith.constant 0 : index
    %198 = vector.load %arg11[%c0_94, %c0_95] : memref<8x4xf32, #tpu.memory_space<vmem>>, vector<4x4xf32>
    tpu.vector_store %arg11[%c0_94, %c0_95], %196 {strides = array<i32>} : memref<8x4xf32, #tpu.memory_space<vmem>>, vector<4x4xf32>,
    %199 = vector.extract_strided_slice %4 {offsets = [1, 0, 0], sizes = [1, 4, 32], strides = [1, 1, 1]} : vector<2x4x32xf32> to vector<1x4x32xf32>
    %200 = vector.shape_cast %199 : vector<1x4x32xf32> to vector<4x32xf32>
    %cst_96 = arith.constant dense<0.000000e+00> : vector<4x4xf32>
    %201 = tpu.matmul %182, %200, %cst_96 {dimension_numbers = #tpu.dot_dimension_numbers<[1], [1], [0], [0], [0, 0, 1, 0], [], []>} : vector<4x32xf32>, vector<4x32xf32>, vector<4x4xf32> -> vector<4x4xf32>
    %202 = vector.extract_strided_slice %5 {offsets = [1, 0, 0], sizes = [1, 1, 4], strides = [1, 1, 1]} : vector<2x1x4xf32> to vector<1x1x4xf32>
    %203 = vector.shape_cast %202 : vector<1x1x4xf32> to vector<1x4xf32>
    %204 = vector.broadcast %203 : vector<1x4xf32> to vector<4x4xf32>
    %205 = arith.addf %201, %204 : vector<4x4xf32>
    %206 = vector.extract_strided_slice %6 {offsets = [1, 0, 0], sizes = [1, 4, 32], strides = [1, 1, 1]} : vector<2x4x32xf32> to vector<1x4x32xf32>
    %207 = vector.shape_cast %206 : vector<1x4x32xf32> to vector<4x32xf32>
    %cst_97 = arith.constant dense<0.000000e+00> : vector<4x4xf32>
    %208 = tpu.matmul %182, %207, %cst_97 {dimension_numbers = #tpu.dot_dimension_numbers<[1], [1], [0], [0], [0, 0, 1, 0], [], []>} : vector<4x32xf32>, vector<4x32xf32>, vector<4x4xf32> -> vector<4x4xf32>
    %209 = vector.extract_strided_slice %7 {offsets = [1, 0, 0], sizes = [1, 1, 4], strides = [1, 1, 1]} : vector<2x1x4xf32> to vector<1x1x4xf32>
    %210 = vector.shape_cast %209 : vector<1x1x4xf32> to vector<1x4xf32>
    %211 = vector.broadcast %210 : vector<1x4xf32> to vector<4x4xf32>
    %212 = arith.addf %208, %211 : vector<4x4xf32>
    %c4_98 = arith.constant 4 : index
    %c0_99 = arith.constant 0 : index
    %213 = vector.load %arg10[%c4_98, %c0_99] : memref<8x4xf32, #tpu.memory_space<vmem>>, vector<4x4xf32>
    tpu.vector_store %arg10[%c4_98, %c0_99], %205 {strides = array<i32>} : memref<8x4xf32, #tpu.memory_space<vmem>>, vector<4x4xf32>,
    %c4_100 = arith.constant 4 : index
    %c0_101 = arith.constant 0 : index
    %214 = vector.load %arg11[%c4_100, %c0_101] : memref<8x4xf32, #tpu.memory_space<vmem>>, vector<4x4xf32>
    tpu.vector_store %arg11[%c4_100, %c0_101], %212 {strides = array<i32>} : memref<8x4xf32, #tpu.memory_space<vmem>>, vector<4x4xf32>,
    %c0_102 = arith.constant 0 : index
    %c0_103 = arith.constant 0 : index
    %215 = vector.load %arg10[%c0_102, %c0_103] : memref<8x4xf32, #tpu.memory_space<vmem>>, vector<8x4xf32>
    %c0_104 = arith.constant 0 : index
    %c0_105 = arith.constant 0 : index
    %216 = vector.load %arg11[%c0_104, %c0_105] : memref<8x4xf32, #tpu.memory_space<vmem>>, vector<8x4xf32>
    %cst_106 = arith.constant dense<0.000000e+00> : vector<8x128xf32>
    %217 = tpu.matmul %215, %125, %cst_106 {dimension_numbers = #tpu.dot_dimension_numbers<[1], [0], [0], [1], [0, 0, 1, 1], [], []>} : vector<8x4xf32>, vector<4x128xf32>, vector<8x128xf32> -> vector<8x128xf32>
    %cst_107 = arith.constant dense<0xFF800000> : vector<128xf32>
    %218 = vector.multi_reduction <maximumf>, %217, %cst_107 [0] : vector<8x128xf32> to vector<128xf32>
    %219 = vector.shape_cast %218 : vector<128xf32> to vector<1x128xf32>
    %220 = vector.broadcast %219 : vector<1x128xf32> to vector<8x128xf32>
    %221 = arith.subf %217, %220 : vector<8x128xf32>
    %222 = math.exp %221 : vector<8x128xf32>
    %cst_108 = arith.constant dense<0.000000e+00> : vector<128xf32>
    %223 = vector.multi_reduction <add>, %222, %cst_108 [0] : vector<8x128xf32> to vector<128xf32>
    %224 = vector.shape_cast %223 : vector<128xf32> to vector<1x128xf32>
    %225 = vector.extract_strided_slice %8 {offsets = [1, 0, 0], sizes = [1, 8, 4], strides = [1, 1, 1]} : vector<2x8x4xf32> to vector<1x8x4xf32>
    %226 = vector.shape_cast %225 : vector<1x8x4xf32> to vector<8x4xf32>
    %cst_109 = arith.constant dense<0.000000e+00> : vector<8x8xf32>
    %227 = tpu.matmul %226, %216, %cst_109 {dimension_numbers = #tpu.dot_dimension_numbers<[1], [1], [0], [0], [0, 0, 1, 0], [], []>} : vector<8x4xf32>, vector<8x4xf32>, vector<8x8xf32> -> vector<8x8xf32>
    %cst_110 = arith.constant dense<0.000000e+00> : vector<8x128xf32>
    %228 = tpu.matmul %227, %222, %cst_110 {dimension_numbers = #tpu.dot_dimension_numbers<[1], [0], [0], [1], [0, 0, 1, 1], [], []>} : vector<8x8xf32>, vector<8x128xf32>, vector<8x128xf32> -> vector<8x128xf32>
    %229 = tpu.reciprocal %224 : vector<1x128xf32> -> vector<1x128xf32>
    %230 = vector.broadcast %229 : vector<1x128xf32> to vector<8x128xf32>
    %231 = arith.mulf %228, %230 : vector<8x128xf32>
    %232 = arith.addf %180, %231 : vector<8x128xf32>
    %233 = vector.broadcast %9 : vector<8x1xf32> to vector<8x128xf32>
    %234 = arith.addf %232, %233 : vector<8x128xf32>
    %c1 = arith.constant 1 : index
    %c0_111 = arith.constant 0 : index
    %c0_112 = arith.constant 0 : index
    %235 = vector.load %arg9[%c1, %c0_111, %c0_112] : memref<2x8x128xf32, #tpu.memory_space<vmem>>, vector<1x8x128xf32>
    %236 = vector.shape_cast %235 : vector<1x8x128xf32> to vector<8x128xf32>
    %237 = vector.shape_cast %234 : vector<8x128xf32> to vector<1x8x128xf32>
    tpu.vector_store %arg9[%c1, %c0_111, %c0_112], %237 {strides = array<i32>} : memref<2x8x128xf32, #tpu.memory_space<vmem>>, vector<1x8x128xf32>,
    return
  }
  func.func @transform_0(%arg0: i32) -> (i32, i32, i32) {
    %c0_i32 = arith.constant 0 : i32
    %c0_i32_0 = arith.constant 0 : i32
    %c0_i32_1 = arith.constant 0 : i32
    return %c0_i32, %c0_i32_0, %arg0 : i32, i32, i32
  }
  func.func @transform_1(%arg0: i32) -> (i32, i32, i32, i32) {
    %c0_i32 = arith.constant 0 : i32
    %c0_i32_0 = arith.constant 0 : i32
    %c0_i32_1 = arith.constant 0 : i32
    %c0_i32_2 = arith.constant 0 : i32
    %c0_i32_3 = arith.constant 0 : i32
    return %c0_i32, %c0_i32_0, %c0_i32_1, %c0_i32_2 : i32, i32, i32, i32
  }
  func.func @transform_2(%arg0: i32) -> (i32, i32, i32) {
    %c0_i32 = arith.constant 0 : i32
    %c0_i32_0 = arith.constant 0 : i32
    %c0_i32_1 = arith.constant 0 : i32
    %c0_i32_2 = arith.constant 0 : i32
    return %c0_i32, %c0_i32_0, %c0_i32_1 : i32, i32, i32
  }
  func.func @transform_3(%arg0: i32) -> (i32, i32, i32) {
    %c0_i32 = arith.constant 0 : i32
    %c0_i32_0 = arith.constant 0 : i32
    %c0_i32_1 = arith.constant 0 : i32
    %c0_i32_2 = arith.constant 0 : i32
    return %c0_i32, %c0_i32_0, %c0_i32_1 : i32, i32, i32
  }
  func.func @transform_4(%arg0: i32) -> (i32, i32, i32) {
    %c0_i32 = arith.constant 0 : i32
    %c0_i32_0 = arith.constant 0 : i32
    %c0_i32_1 = arith.constant 0 : i32
    %c0_i32_2 = arith.constant 0 : i32
    return %c0_i32, %c0_i32_0, %c0_i32_1 : i32, i32, i32
  }
  func.func @transform_5(%arg0: i32) -> (i32, i32, i32) {
    %c0_i32 = arith.constant 0 : i32
    %c0_i32_0 = arith.constant 0 : i32
    %c0_i32_1 = arith.constant 0 : i32
    %c0_i32_2 = arith.constant 0 : i32
    return %c0_i32, %c0_i32_0, %c0_i32_1 : i32, i32, i32
  }
  func.func @transform_6(%arg0: i32) -> (i32, i32, i32) {
    %c0_i32 = arith.constant 0 : i32
    %c0_i32_0 = arith.constant 0 : i32
    %c0_i32_1 = arith.constant 0 : i32
    %c0_i32_2 = arith.constant 0 : i32
    return %c0_i32, %c0_i32_0, %c0_i32_1 : i32, i32, i32
  }
  func.func @transform_7(%arg0: i32) -> (i32, i32) {
    %c0_i32 = arith.constant 0 : i32
    %c0_i32_0 = arith.constant 0 : i32
    %c0_i32_1 = arith.constant 0 : i32
    return %c0_i32, %c0_i32_0 : i32, i32
  }
  func.func @transform_8(%arg0: i32) -> (i32, i32, i32) {
    %c0_i32 = arith.constant 0 : i32
    %c0_i32_0 = arith.constant 0 : i32
    %c0_i32_1 = arith.constant 0 : i32
    return %c0_i32, %c0_i32_0, %arg0 : i32, i32, i32
  }
}

</mosaic_0001>

<bundles_post_ra>
// kernel: former2res.1
= control target key start
LH: loop header
LB: loop body
LE: loop exit
PB: predicated region body
PF: predicated region fallthrough
CT: control target
= control target key end

     0   :  { %s3017_s27 = smov 0   ;;  %s3019_s28 = smov 0   ;;  %s3358_s0 = inlined_call_operand.vmem [shape: f32[2,4,256], index: 0, kind: input, shape index: {}]   ;;  %s3359_s1 = inlined_call_operand.vmem [shape: f32[2,2,4,32], index: 1, kind: input, shape index: {}]   ;;  %s3360_s2 = inlined_call_operand.vmem [shape: f32[2,4,32], index: 2, kind: input, shape index: {}]   ;;  %s3361_s3 = inlined_call_operand.vmem [shape: f32[2,1,4], index: 3, kind: input, shape index: {}]   ;;  %s3362_s4 = inlined_call_operand.vmem [shape: f32[2,4,32], index: 4, kind: input, shape index: {}]   ;;  %s3363_s5 = inlined_call_operand.vmem [shape: f32[2,1,4], index: 5, kind: input, shape index: {}]   ;;  %s3364_s6 = inlined_call_operand.vmem [shape: f32[2,8,4], index: 6, kind: input, shape index: {}]   ;;  %s3365_s7 = inlined_call_operand.vmem [shape: f32[8,1], index: 7, kind: input, shape index: {}]   ;;  %s3366_s8 = inlined_call_operand.vmem [shape: f32[2,8,256], index: 8, kind: output, shape index: {}]  }
   0x1   :  { %s3021_s29 = smov 0  }
   0x2 LB: > { %s2635_s30 = sadd.s32 4294967295, %s2967_s29   ;;  %s3034_s9 = sadd.s32 1, %s2967_s29   ;;  %s2967_s29 = sphi %s3021_s29, %s3370_s29   ;;  %s2963_s28 = sphi %s3019_s28, %s3369_s28   ;;  %s2959_s27 = sphi %s3017_s27, %s3368_s27  }
   0x3   : > { %s22_s10 = ssub.s32 %s2967_s29, %s3034_s9  ;;  %s25_s11 = sadd.s32 1, %s2963_s28 }
   0x4   : > { %p23_p0 = scmp.eq.s32.totalorder %s22_s10, 0  ;;  %p32_p1 = scmp.ne.s32.totalorder %s2963_s28, %s2959_s27 }
   0x5   : > { %p33_p2 = scmp.eq.s32.totalorder %s2967_s29, 0  ;;  %p209_p3 = scmp.eq.s32.totalorder %s2635_s30, 1 }
   0x6   : > { %s3045_s12 = scalar_select %p23_p0, %s2963_s28, %s25_s11  }
   0x7   : > { %p34_p4 = por %p33_p2, %p32_p1  ;;  %p3047_p5 = por %p209_p3, %p32_p1 }
   0x8   : > { %p2638_p6 = scmp.ge.s32.totalorder %s2967_s29, 2 }
   0xa   : > { %252 = sbr.rel (%p2638_p6) target bundleno = 20 (0x14), region = 44 }
   0xf   : > { %255 = sbr.rel (!%p34_p4) target bundleno = 20 (0x14), region = 48  ;;  %s257_s14 = sand.u32 (%p34_p4), 1, %s2963_s28  }
  0x10   : > { %s2640_s15 = sshll.u32 (%p34_p4), %s2967_s29, 2  ;;  %s2639_s16 = sshll.u32 (%p34_p4), %s257_s14, 3 }
  0x11   : > { %s261_s19 = scalar_lea.vmem (%p34_p4), %s3358_s0, %s2640_s15  ;;  %s259_s20 = scalar_lea.vmem (%p34_p4), [#allocation4], %s2639_s16 }
  0x12   : > { %v278_v0 = vld [vmem:[%s261_s19] sm:$0xf] (%p34_p4)  ;;  %v280_v1 = vld [vmem:[%s261_s19 + $0x8] sm:$0xf] (%p34_p4) }
  0x13   : > { %279 = vst [vmem:[%s259_s20] sm:$0xf] (%p34_p4), %v278_v0  ;;  %281 = vst [vmem:[%s259_s20 + $0x4] sm:$0xf] (%p34_p4), %v280_v1 }
  0x14 PF: > { %p2641_p7 = scmp.ge.s32.totalorder %s2967_s29, 1  ;;  %p308_p8 = scmp.lt.s32.totalorder %s2967_s29, 3 }
  0x16   : > { %p309_p9 = pnand %p2641_p7, %p308_p8 }
  0x17   : > { %s315_s16 = sand.u32 (!%p309_p9), 1, %s2959_s27  }
  0x18   : > { %312 = sbr.rel (%p309_p9) target bundleno = 1894 (0x766), region = 89  ;;  %s3115_s17 = sshll.u32 (!%p309_p9), %s315_s16, 3 }
  0x19   : > { %s317_s18 = scalar_lea.vmem (!%p309_p9), [#allocation4], %s3115_s17  ;;  %s2643_s17 = sshll.u32 (!%p309_p9), %s315_s16, 4 }
  0x1d   : > { %v3062_v2 = vld [vmem:[%s3360_s2] sm:$0xf]  ;;  %vm372_vm0 = vcmask 261120   ;;  %v2969_v3 = vmov 0.0   ;;  %vm2970_vm1 = vmmov 0   ;;  %vm697_vm2 = vcmask 1043456  }
  0x1e   : > { %2761 = vmatprep.subr.mxu0 %v2969_v3  ;;  %2763 = vmatprep.mubr.msk.f32.mxu0 %vm2970_vm1, %v2969_v3  ;;  %v3070_v4 = vld [vmem:[%s3362_s4] sm:$0xf]  ;;  %v3082_v6 = vld [vmem:[%s3360_s2 + $0x4] sm:$0xf]  ;;  %v347_v8 = vld [vmem:[%s317_s18] sm:$0xf] }
  0x1f   : > { %2762 = vmatpush3.xpose.msk.msra.mxu0 %vm372_vm0, %v3062_v2  ;;  %v351_v5 = vld [vmem:[%s3359_s1] sm:$0xf]  ;;  %2766 = vmatprep.subr.mxu1 %v2969_v3  ;;  %v3093_v7 = vld [vmem:[%s3362_s4 + $0x4] sm:$0xf]  ;;  %v349_v9 = vmul.f32 0.5, %v347_v8  ;;  %vm528_vm3 = vcmask 27648  }
  0x20   : > { %2771 = vmatprep.subr.mxu0 %v2969_v3  ;;  %2767 = vmatpush3.xpose.msk.msra.mxu1 %vm372_vm0, %v3070_v4  ;;  %v3125_v10 = vld [vmem:[%s3361_s3] ss:$0 sm:$0xff]  ;;  %v3136_v15 = vld [vmem:[%s3361_s3 + $0x1] ss:$0 sm:$0xff]  ;;  %vm693_vm4 = vcmask 31744   ;;  %vm862_vm5 = vcmask 64512  }
  0x21   : > { %2768 = vmatprep.mubr.msk.f32.mxu1 %vm2970_vm1, %v2969_v3  ;;  %2776 = vmatprep.subr.mxu1 %v2969_v3  ;;  %v3130_v12 = vld [vmem:[%s3363_s5] ss:$0 sm:$0xff]  ;;  %v3143_v20 = vld [vmem:[%s3363_s5 + $0x1] ss:$0 sm:$0xff]  ;;  %v352_v29 = vld [vmem:[%s3359_s1 + $0x4] sm:$0xf] }
  0x22   : > { %2764 = vmatmul.mubr.msk.f32.vlgmr.msra.gmra.mxu0 %vm372_vm0, %v351_v5  ;;  %v3157_v28 = vld [vmem:[%s3364_s6] sm:$0xff]  ;;  %s2702_s25 = sshll.u32 (%p3047_p5), %s2635_s30, 3 }
  0x23   : > { %2772 = vmatpush3.xpose.msk.msra.mxu0 %vm372_vm0, %v3082_v6  ;;  %2773 = vmatprep.mubr.msk.f32.mxu0 %vm2970_vm1, %v2969_v3  ;;  %s2541_s11 = scalar_lea.vmem (%p3047_p5), %s3366_s8, %s2702_s25 }
  0x24   : > { %2769 = vmatmul.mubr.msk.f32.vlgmr.msra.gmra.mxu1 %vm372_vm0, %v351_v5  ;;  %2781 = vmatprep.subr.mxu0 %v2969_v3 }
  0x25   : > { %2777 = vmatpush3.xpose.msk.msra.mxu1 %vm372_vm0, %v3093_v7  ;;  %2778 = vmatprep.mubr.msk.f32.mxu1 %vm2970_vm1, %v2969_v3 }
  0x26   : > { %2774 = vmatmul.mubr.msk.f32.vlgmr.msra.gmra.mxu0 %vm372_vm0, %v351_v5  ;;  %2786 = vmatprep.subr.mxu1 %v2969_v3 }
  0x27   : > { %2783 = vmatprep.mubr.msk.f32.mxu0 %vm2970_vm1, %v2969_v3  ;;  %2782 = vmatpush3.msk.msra.mxu0 %vm697_vm2, %v349_v9 }
  0x28   : > { %2779 = vmatmul.mubr.msk.f32.vlgmr.msra.gmra.mxu1 %vm372_vm0, %v351_v5  ;;  %2791 = vmatprep.subr.mxu0 %v2969_v3 }
  0x29   : > { %2788 = vmatprep.mubr.msk.f32.mxu1 %vm2970_vm1, %v2969_v3 }
  0xe2   : > { %v445_v11 = vpop.f32.mrf.mxu0 }
  0xe3   : > { %v446_v13 = vadd.f32 %v3125_v10, %v445_v11 }
  0xe4   : > { %v2765_v14 = vpop.f32.mrf.mxu0  ;;  %v524_v16 = vpop.f32.mrf.mxu1 }
  0xe5   : > { %529 = vst.msk [vmem:[#allocation2] sm:$0xf] %vm528_vm3, %v446_v13  ;;  %v525_v17 = vadd.f32 %v3130_v12, %v524_v16 }
  0xe6   : > { %v606_v18 = vpop.f32.mrf.mxu0  ;;  %v2770_v19 = vpop.f32.mrf.mxu1 }
  0xe7   : > { %v607_v21 = vadd.f32 %v3136_v15, %v606_v18  ;;  %530 = vst.msk [vmem:[#allocation3] sm:$0xf] %vm528_vm3, %v525_v17 }
  0xe8   : > { %v2775_v22 = vpop.f32.mrf.mxu0  ;;  %v685_v23 = vpop.f32.mrf.mxu1 }
  0xe9   : > { %689 = vst.msk [vmem:[#allocation2 + $0x4] sm:$0xf] %vm528_vm3, %v607_v21  ;;  %v686_v24 = vadd.f32 %v3143_v20, %v685_v23  ;;  %v3214_v22 = vld [vmem:[%s3364_s6 + $0x8] sm:$0xff] }
  0xea   : > { %v2780_v25 = vpop.f32.mrf.mxu1 }
  0xeb   : > { %690 = vst.msk [vmem:[#allocation3 + $0x4] sm:$0xf] %vm528_vm3, %v686_v24  ;;  %v353_v24 = vld [vmem:[%s3359_s1 + $0x8] sm:$0xf]  ;;  %v365_v25 = vld [vmem:[%s3365_s7] sm:$0xff] }
  0xf0   : > { %v691_v26 = vld [vmem:[#allocation2] sm:$0xff] }
  0xf1   : > { %2784 = vmatmul.mubr.msk.f32.vlgmr.msra.gmra.mxu0 %vm693_vm4, %v691_v26  ;;  %v2971_v26 = vmov 0  }
  0xf2   : > { %v692_v27 = vld [vmem:[#allocation3] sm:$0xff]  ;;  %2793 = vmatprep.mubr.msk.f32.mxu0 %vm2970_vm1, %v2969_v3  ;;  %2928 = vset.pattern.permute.xlu0 %v2971_v26 }
  0xf3   : > { %2787 = vmatpush3.xpose.msk.msra.mxu1 %vm693_vm4, %v692_v27  ;;  %1470 = vperm.xlu0 %2928, %v365_v25   ;;  %v348_v27 = vld [vmem:[%s317_s18 + $0x4] sm:$0xf]  ;;  %s3276_s18 = scalar_lea.vmem [#allocation5], %s2643_s17 }
  0xf4   : > { %2796 = vmatprep.subr.mxu1 %v2969_v3 }
  0xf6   : > { %2789 = vmatmul.mubr.msk.f32.vlgmr.msra.gmra.mxu1 %vm693_vm4, %v3157_v28 }
  0xf7   : > { %2797 = vmatpush3.xpose.msk.msra.mxu1 %vm372_vm0, %v3062_v2  ;;  %2798 = vmatprep.mubr.msk.f32.mxu1 %vm2970_vm1, %v2969_v3 }
  0xf8   : > { %2806 = vmatprep.subr.mxu1 %v2969_v3 }
  0xfa   : > { %2799 = vmatmul.mubr.msk.f32.vlgmr.msra.gmra.mxu1 %vm372_vm0, %v352_v29 }
  0xfb   : > { %2807 = vmatpush3.xpose.msk.msra.mxu1 %vm372_vm0, %v3082_v6  ;;  %2808 = vmatprep.mubr.msk.f32.mxu1 %vm2970_vm1, %v2969_v3 }
  0xfc   : > { %2816 = vmatprep.subr.mxu1 %v2969_v3 }
  0xfe   : > { %2809 = vmatmul.mubr.msk.f32.vlgmr.msra.gmra.mxu1 %vm372_vm0, %v352_v29 }
  0xff   : > { %2817 = vmatpush3.msk.msra.mxu1 %vm697_vm2, %v349_v9  ;;  %2818 = vmatprep.mubr.msk.f32.mxu1 %vm2970_vm1, %v2969_v3 }
 0x100   : > { %2826 = vmatprep.subr.mxu1 %v2969_v3 }
 0x1b1   : > { %v767_v30 = vpop.f32.mrf.mxu0 }
 0x1b2   : > { %v771_v31 = vrot.slane %v767_v30, 4 }
 0x1b3   : > { %v2785_v32 = vpop.f32.mrf.mxu0 }
 0x1b4   : > { %v772_v33 = vmax.f32 %v767_v30, %v771_v31 }
 0x1b6   : > { %v773_v34 = vrot.slane %v772_v33, 2  ;;  %v858_v35 = vpop.f32.mrf.mxu1 }
 0x1b8   : > { %v774_v36 = vmax.f32 %v772_v33, %v773_v34  ;;  %v2790_v37 = vpop.f32.mrf.mxu1 }
 0x1ba   : > { %v775_v38 = vrot.slane %v774_v36, 1  ;;  %v1008_v39 = vpop.f32.mrf.mxu1 }
 0x1bb   : > { %v1009_v40 = vadd.f32 %v3125_v10, %v1008_v39 }
 0x1bc   : > { %v776_v41 = vmax.f32 %v774_v36, %v775_v38  ;;  %v2800_v42 = vpop.f32.mrf.mxu1 }
 0x1bd   : > { %1082 = vst.msk [vmem:[#allocation2] sm:$0xf] %vm528_vm3, %v1009_v40 }
 0x1be   : > { %v777_v43 = vsub.f32 %v767_v30, %v776_v41  ;;  %v1150_v44 = vpop.f32.mrf.mxu1 }
 0x1bf   : > { %v1151_v45 = vadd.f32 %v3136_v15, %v1150_v44 }
 0x1c0   : > { %v778_v46 = vmul.f32 1.442695, %v777_v43  ;;  %v2810_v47 = vpop.f32.mrf.mxu1 }
 0x1c1   : > { %1224 = vst.msk [vmem:[#allocation2 + $0x4] sm:$0xf] %vm528_vm3, %v1151_v45 }
 0x1c2   : > { %2929 = vpow2.f32 %v778_v46 }
 0x1c8   : > { %v1226_v48 = vld [vmem:[#allocation2] sm:$0xff] }
 0x1c9   : > { %2819 = vmatmul.mubr.msk.f32.vlgmr.msra.gmra.mxu1 %vm693_vm4, %v1226_v48 }
 0x1ca   : > { %2828 = vmatprep.mubr.msk.f32.mxu1 %vm2970_vm1, %v2969_v3 }
 0x1cf   : > { %v2930_v49 = vpop.eup %2929 }
 0x1d0   : > { %2792 = vmatpush3.msra.mxu0 %v2930_v49  ;;  %v780_v50 = vrot.slane %v2930_v49, 4 }
 0x1d1   : > { %2794 = vmatmul.mubr.msk.f32.vlgmr.msra.gmra.mxu0 %vm862_vm5, %v858_v35  ;;  %2801 = vmatprep.subr.mxu0 %v2969_v3 }
 0x1d2   : > { %2802 = vmatpush3.xpose.msk.msra.mxu0 %vm372_vm0, %v3070_v4  ;;  %2803 = vmatprep.mubr.msk.f32.mxu0 %vm2970_vm1, %v2969_v3  ;;  %v781_v51 = vadd.f32 %v2930_v49, %v780_v50  ;;  %v3271_v49 = vpop.permute.xlu0 %1470 }
 0x1d3   : > { %2811 = vmatprep.subr.mxu0 %v2969_v3 }
 0x1d4   : > { %v782_v52 = vrot.slane %v781_v51, 2 }
 0x1d5   : > { %2804 = vmatmul.mubr.msk.f32.vlgmr.msra.gmra.mxu0 %vm372_vm0, %v352_v29 }
 0x1d6   : > { %2812 = vmatpush3.xpose.msk.msra.mxu0 %vm372_vm0, %v3093_v7  ;;  %2813 = vmatprep.mubr.msk.f32.mxu0 %vm2970_vm1, %v2969_v3  ;;  %v783_v53 = vadd.f32 %v782_v52, %v781_v51 }
 0x1d7   : > { %2821 = vmatprep.subr.mxu0 %v2969_v3 }
 0x1d8   : > { %v784_v54 = vrot.slane %v783_v53, 1 }
 0x1d9   : > { %2814 = vmatmul.mubr.msk.f32.vlgmr.msra.gmra.mxu0 %vm372_vm0, %v352_v29  ;;  %v3242_v29 = vmul.f32 0.5, %v348_v27 }
 0x1da   : > { %2823 = vmatprep.mubr.msk.f32.mxu0 %vm2970_vm1, %v2969_v3  ;;  %v785_v55 = vadd.f32 %v784_v54, %v783_v53 }
 0x1dc   : > { %2931 = vrcp.f32 %v785_v55 }
 0x1e9   : > { %v2932_v62 = vpop.eup %2931 }
 0x289   : > { %v1297_v56 = vpop.f32.mrf.mxu1 }
 0x28a   : > { %v1301_v57 = vrot.slane %v1297_v56, 4 }
 0x28b   : > { %v2820_v58 = vpop.f32.mrf.mxu1 }
 0x28c   : > { %v1302_v59 = vmax.f32 %v1297_v56, %v1301_v57 }
 0x28e   : > { %v1303_v60 = vrot.slane %v1302_v59, 2 }
 0x290   : > { %v1304_v61 = vmax.f32 %v1302_v59, %v1303_v60 }
 0x291   : > { %v932_v63 = vpop.f32.mrf.mxu0 }
 0x292   : > { %v3204_v0 = vmul.f32 %v2932_v62, %v932_v63  ;;  %v1305_v1 = vrot.slane %v1304_v61, 1 }
 0x293   : > { %v2795_v5 = vpop.f32.mrf.mxu0 }
 0x294   : > { %v1306_v8 = vmax.f32 %v1304_v61, %v1305_v1 }
 0x295   : > { %v1078_v9 = vpop.f32.mrf.mxu0 }
 0x296   : > { %v1079_v11 = vadd.f32 %v3130_v12, %v1078_v9  ;;  %v1307_v13 = vsub.f32 %v1297_v56, %v1306_v8 }
 0x297   : > { %v2805_v14 = vpop.f32.mrf.mxu0 }
 0x298   : > { %1083 = vst.msk [vmem:[#allocation3] sm:$0xf] %vm528_vm3, %v1079_v11  ;;  %v1308_v16 = vmul.f32 1.442695, %v1307_v13 }
 0x299   : > { %v1220_v17 = vpop.f32.mrf.mxu0 }
 0x29a   : > { %v1221_v18 = vadd.f32 %v3143_v20, %v1220_v17  ;;  %2933 = vpow2.f32 %v1308_v16 }
 0x29b   : > { %v2815_v19 = vpop.f32.mrf.mxu0 }
 0x29c   : > { %1225 = vst.msk [vmem:[#allocation3 + $0x4] sm:$0xf] %vm528_vm3, %v1221_v18 }
 0x2a3   : > { %v1227_v21 = vld [vmem:[#allocation3] sm:$0xff] }
 0x2a4   : > { %2822 = vmatpush3.xpose.msk.msra.mxu0 %vm693_vm4, %v1227_v21 }
 0x2a5   : > { %2831 = vmatprep.subr.mxu0 %v2969_v3 }
 0x2a7   : > { %2824 = vmatmul.mubr.msk.f32.vlgmr.msra.gmra.mxu0 %vm693_vm4, %v3214_v22  ;;  %v2934_v23 = vpop.eup %2933 }
 0x2a8   : > { %2832 = vmatpush3.xpose.msk.msra.mxu0 %vm372_vm0, %v3062_v2  ;;  %2833 = vmatprep.mubr.msk.f32.mxu0 %vm2970_vm1, %v2969_v3  ;;  %v1310_v39 = vrot.slane %v2934_v23, 4 }
 0x2a9   : > { %2841 = vmatprep.subr.mxu0 %v2969_v3  ;;  %2827 = vmatpush3.msra.mxu1 %v2934_v23 }
 0x2aa   : > { %2836 = vmatprep.subr.mxu1 %v2969_v3  ;;  %v1311_v40 = vadd.f32 %v2934_v23, %v1310_v39 }
 0x2ab   : > { %2834 = vmatmul.mubr.msk.f32.vlgmr.msra.gmra.mxu0 %vm372_vm0, %v353_v24 }
 0x2ac   : > { %2842 = vmatpush3.xpose.msk.msra.mxu0 %vm372_vm0, %v3082_v6  ;;  %2843 = vmatprep.mubr.msk.f32.mxu0 %vm2970_vm1, %v2969_v3  ;;  %v1312_v41 = vrot.slane %v1311_v40, 2 }
 0x2ad   : > { %2851 = vmatprep.subr.mxu0 %v2969_v3 }
 0x2ae   : > { %v1313_v42 = vadd.f32 %v1312_v41, %v1311_v40 }
 0x2af   : > { %2844 = vmatmul.mubr.msk.f32.vlgmr.msra.gmra.mxu0 %vm372_vm0, %v353_v24 }
 0x2b0   : > { %2853 = vmatprep.mubr.msk.f32.mxu0 %vm2970_vm1, %v2969_v3  ;;  %2852 = vmatpush3.msk.msra.mxu0 %vm697_vm2, %v3242_v29  ;;  %v1314_v43 = vrot.slane %v1313_v42, 1 }
 0x2b1   : > { %2861 = vmatprep.subr.mxu0 %v2969_v3 }
 0x2b2   : > { %v1315_v44 = vadd.f32 %v1314_v43, %v1313_v42 }
 0x2b4   : > { %2935 = vrcp.f32 %v1315_v44 }
 0x2c1   : > { %v2936_v45 = vpop.eup %2935 }
 0x367   : > { %v1388_v30 = vpop.f32.mrf.mxu0 }
 0x368   : > { %2829 = vmatmul.mubr.msk.f32.vlgmr.msra.gmra.mxu1 %vm862_vm5, %v1388_v30 }
 0x369   : > { %v2825_v31 = vpop.f32.mrf.mxu0  ;;  %2837 = vmatpush3.xpose.msk.msra.mxu1 %vm372_vm0, %v3070_v4  ;;  %2838 = vmatprep.mubr.msk.f32.mxu1 %vm2970_vm1, %v2969_v3 }
 0x36a   : > { %2846 = vmatprep.subr.mxu1 %v2969_v3 }
 0x36b   : > { %v1544_v32 = vpop.f32.mrf.mxu0 }
 0x36c   : > { %2839 = vmatmul.mubr.msk.f32.vlgmr.msra.gmra.mxu1 %vm372_vm0, %v353_v24  ;;  %v1545_v33 = vadd.f32 %v3125_v10, %v1544_v32 }
 0x36d   : > { %2847 = vmatpush3.xpose.msk.msra.mxu1 %vm372_vm0, %v3093_v7  ;;  %2848 = vmatprep.mubr.msk.f32.mxu1 %vm2970_vm1, %v2969_v3  ;;  %v2835_v34 = vpop.f32.mrf.mxu0 }
 0x36e   : > { %1618 = vst.msk [vmem:[#allocation2] sm:$0xf] %vm528_vm3, %v1545_v33  ;;  %2856 = vmatprep.subr.mxu1 %v2969_v3 }
 0x36f   : > { %v1686_v35 = vpop.f32.mrf.mxu0 }
 0x370   : > { %2849 = vmatmul.mubr.msk.f32.vlgmr.msra.gmra.mxu1 %vm372_vm0, %v353_v24  ;;  %v1687_v36 = vadd.f32 %v3136_v15, %v1686_v35 }
 0x371   : > { %v2845_v37 = vpop.f32.mrf.mxu0  ;;  %2858 = vmatprep.mubr.msk.f32.mxu1 %vm2970_vm1, %v2969_v3 }
 0x372   : > { %1760 = vst.msk [vmem:[#allocation2 + $0x4] sm:$0xf] %vm528_vm3, %v1687_v36 }
 0x379   : > { %v1762_v38 = vld [vmem:[#allocation2] sm:$0xff] }
 0x37a   : > { %2854 = vmatmul.mubr.msk.f32.vlgmr.msra.gmra.mxu0 %vm693_vm4, %v1762_v38 }
 0x37b   : > { %2863 = vmatprep.mubr.msk.f32.mxu0 %vm2970_vm1, %v2969_v3 }
 0x428   : > { %v1461_v46 = vpop.f32.mrf.mxu1 }
 0x429   : > { %v1466_v47 = vmul.f32 %v2936_v45, %v1461_v46 }
 0x42a   : > { %v2830_v48 = vpop.f32.mrf.mxu1 }
 0x42b   : > { %v1467_v50 = vadd.f32 %v1466_v47, %v3204_v0  ;;  %v354_v0 = vld [vmem:[%s3359_s1 + $0xc] sm:$0xf] }
 0x42c   : > { %v1614_v51 = vpop.f32.mrf.mxu1 }
 0x42d   : > { %v1473_v52 = vadd.f32 %v3271_v49, %v1467_v50  ;;  %v1615_v53 = vadd.f32 %v3130_v12, %v1614_v51 }
 0x42e   : > { %v2840_v54 = vpop.f32.mrf.mxu1 }
 0x42f   : > { %1474 = vst [vmem:[%s3276_s18] sm:$0xff] %v1473_v52  ;;  %1619 = vst.msk [vmem:[#allocation3] sm:$0xf] %vm528_vm3, %v1615_v53 }
 0x430   : > { %v1756_v55 = vpop.f32.mrf.mxu1 }
 0x431   : > { %v1757_v56 = vadd.f32 %v3143_v20, %v1756_v55 }
 0x432   : > { %v2850_v57 = vpop.f32.mrf.mxu1 }
 0x433   : > { %1761 = vst.msk [vmem:[#allocation3 + $0x4] sm:$0xf] %vm528_vm3, %v1757_v56 }
 0x43a   : > { %v1763_v58 = vld [vmem:[#allocation3] sm:$0xff]  ;;  %v1836_v59 = vpop.f32.mrf.mxu0 }
 0x43b   : > { %2857 = vmatpush3.xpose.msk.msra.mxu1 %vm693_vm4, %v1763_v58  ;;  %v1840_v60 = vrot.slane %v1836_v59, 4 }
 0x43c   : > { %2866 = vmatprep.subr.mxu1 %v2969_v3  ;;  %v2855_v61 = vpop.f32.mrf.mxu0 }
 0x43d   : > { %v1841_v62 = vmax.f32 %v1836_v59, %v1840_v60 }
 0x43e   : > { %2859 = vmatmul.mubr.msk.f32.vlgmr.msra.gmra.mxu1 %vm693_vm4, %v3157_v28 }
 0x43f   : > { %v1842_v63 = vrot.slane %v1841_v62, 2  ;;  %2867 = vmatpush3.xpose.msk.msra.mxu1 %vm372_vm0, %v3062_v2  ;;  %2868 = vmatprep.mubr.msk.f32.mxu1 %vm2970_vm1, %v2969_v3 }
 0x440   : > { %2876 = vmatprep.subr.mxu1 %v2969_v3 }
 0x441   : > { %v1843_v1 = vmax.f32 %v1841_v62, %v1842_v63 }
 0x442   : > { %2869 = vmatmul.mubr.msk.f32.vlgmr.msra.gmra.mxu1 %vm372_vm0, %v354_v0 }
 0x443   : > { %v1844_v5 = vrot.slane %v1843_v1, 1  ;;  %2877 = vmatpush3.xpose.msk.msra.mxu1 %vm372_vm0, %v3082_v6  ;;  %2878 = vmatprep.mubr.msk.f32.mxu1 %vm2970_vm1, %v2969_v3 }
 0x444   : > { %2886 = vmatprep.subr.mxu1 %v2969_v3 }
 0x445   : > { %v1845_v2 = vmax.f32 %v1843_v1, %v1844_v5 }
 0x446   : > { %2879 = vmatmul.mubr.msk.f32.vlgmr.msra.gmra.mxu1 %vm372_vm0, %v354_v0 }
 0x447   : > { %v1846_v28 = vsub.f32 %v1836_v59, %v1845_v2  ;;  %2887 = vmatpush3.msk.msra.mxu1 %vm697_vm2, %v3242_v29  ;;  %2888 = vmatprep.mubr.msk.f32.mxu1 %vm2970_vm1, %v2969_v3  ;;  %v2572_v59 = vld [vmem:[%s3276_s18] sm:$0xff] (%p3047_p5) }
 0x448   : > { %2896 = vmatprep.subr.mxu1 %v2969_v3  ;;  %2573 = vst [vmem:[%s2541_s11] sm:$0xff] (%p3047_p5), %v2572_v59 }
 0x449   : > { %v1847_v8 = vmul.f32 1.442695, %v1846_v28 }
 0x44b   : > { %2937 = vpow2.f32 %v1847_v8 }
 0x458   : > { %v2938_v6 = vpop.eup %2937 }
 0x459   : > { %2862 = vmatpush3.msra.mxu0 %v2938_v6 }
 0x45a   : > { %2871 = vmatprep.subr.mxu0 %v2969_v3 }
 0x4fe   : > { %v1924_v9 = vpop.f32.mrf.mxu1 }
 0x4ff   : > { %2864 = vmatmul.mubr.msk.f32.vlgmr.msra.gmra.mxu0 %vm862_vm5, %v1924_v9 }
 0x500   : > { %v2860_v11 = vpop.f32.mrf.mxu1  ;;  %2872 = vmatpush3.xpose.msk.msra.mxu0 %vm372_vm0, %v3070_v4  ;;  %2873 = vmatprep.mubr.msk.f32.mxu0 %vm2970_vm1, %v2969_v3 }
 0x501   : > { %2881 = vmatprep.subr.mxu0 %v2969_v3 }
 0x502   : > { %v2073_v13 = vpop.f32.mrf.mxu1 }
 0x503   : > { %2874 = vmatmul.mubr.msk.f32.vlgmr.msra.gmra.mxu0 %vm372_vm0, %v354_v0  ;;  %v2074_v14 = vadd.f32 %v3125_v10, %v2073_v13  ;;  %v1849_v10 = vrot.slane %v2938_v6, 4 }
 0x504   : > { %2882 = vmatpush3.xpose.msk.msra.mxu0 %vm372_vm0, %v3093_v7  ;;  %2883 = vmatprep.mubr.msk.f32.mxu0 %vm2970_vm1, %v2969_v3  ;;  %v2870_v16 = vpop.f32.mrf.mxu1 }
 0x505   : > { %2147 = vst.msk [vmem:[#allocation2] sm:$0xf] %vm528_vm3, %v2074_v14  ;;  %2891 = vmatprep.subr.mxu0 %v2969_v3  ;;  %v1850_v19 = vadd.f32 %v2938_v6, %v1849_v10 }
 0x506   : > { %v2215_v4 = vpop.f32.mrf.mxu1 }
 0x507   : > { %2884 = vmatmul.mubr.msk.f32.vlgmr.msra.gmra.mxu0 %vm372_vm0, %v354_v0  ;;  %v2216_v17 = vadd.f32 %v3136_v15, %v2215_v4  ;;  %v1851_v21 = vrot.slane %v1850_v19, 2 }
 0x508   : > { %v2880_v18 = vpop.f32.mrf.mxu1  ;;  %2893 = vmatprep.mubr.msk.f32.mxu0 %vm2970_vm1, %v2969_v3 }
 0x509   : > { %2289 = vst.msk [vmem:[#allocation2 + $0x4] sm:$0xf] %vm528_vm3, %v2216_v17  ;;  %v1852_v23 = vadd.f32 %v1851_v21, %v1850_v19 }
 0x50b   : > { %v1853_v24 = vrot.slane %v1852_v23, 1 }
 0x50d   : > { %v1854_v25 = vadd.f32 %v1853_v24, %v1852_v23 }
 0x50f   : > { %2939 = vrcp.f32 %v1854_v25 }
 0x510   : > { %v2291_v7 = vld [vmem:[#allocation2] sm:$0xff] }
 0x511   : > { %2889 = vmatmul.mubr.msk.f32.vlgmr.msra.gmra.mxu1 %vm693_vm4, %v2291_v7 }
 0x512   : > { %2898 = vmatprep.mubr.msk.f32.mxu1 %vm2970_vm1, %v2969_v3 }
 0x51c   : > { %v2940_v15 = vpop.eup %2939 }
 0x5bf   : > { %v1997_v26 = vpop.f32.mrf.mxu0 }
 0x5c0   : > { %v2002_v27 = vmul.f32 %v2940_v15, %v1997_v26 }
 0x5c1   : > { %v2865_v29 = vpop.f32.mrf.mxu0 }
 0x5c3   : > { %v2143_v30 = vpop.f32.mrf.mxu0 }
 0x5c4   : > { %v2144_v31 = vadd.f32 %v3130_v12, %v2143_v30 }
 0x5c5   : > { %v2875_v32 = vpop.f32.mrf.mxu0 }
 0x5c6   : > { %2148 = vst.msk [vmem:[#allocation3] sm:$0xf] %vm528_vm3, %v2144_v31 }
 0x5c7   : > { %v2285_v33 = vpop.f32.mrf.mxu0 }
 0x5c8   : > { %v2286_v3 = vadd.f32 %v3143_v20, %v2285_v33 }
 0x5c9   : > { %v2885_v34 = vpop.f32.mrf.mxu0 }
 0x5ca   : > { %2290 = vst.msk [vmem:[#allocation3 + $0x4] sm:$0xf] %vm528_vm3, %v2286_v3 }
 0x5d1   : > { %v2292_v35 = vld [vmem:[#allocation3] sm:$0xff]  ;;  %v2362_v36 = vpop.f32.mrf.mxu1 }
 0x5d2   : > { %2892 = vmatpush3.xpose.msk.msra.mxu0 %vm693_vm4, %v2292_v35  ;;  %v2366_v37 = vrot.slane %v2362_v36, 4 }
 0x5d3   : > { %v2890_v38 = vpop.f32.mrf.mxu1 }
 0x5d4   : > { %v2367_v39 = vmax.f32 %v2362_v36, %v2366_v37 }
 0x5d5   : > { %2894 = vmatmul.mubr.msk.f32.vlgmr.msra.gmra.mxu0 %vm693_vm4, %v3214_v22 }
 0x5d6   : > { %v2368_v12 = vrot.slane %v2367_v39, 2 }
 0x5d8   : > { %v2369_v40 = vmax.f32 %v2367_v39, %v2368_v12 }
 0x5da   : > { %v2370_v41 = vrot.slane %v2369_v40, 1 }
 0x5dc   : > { %v2371_v42 = vmax.f32 %v2369_v40, %v2370_v41 }
 0x5de   : > { %v2372_v43 = vsub.f32 %v2362_v36, %v2371_v42 }
 0x5e0   : > { %v2373_v44 = vmul.f32 1.442695, %v2372_v43 }
 0x5e2   : > { %2941 = vpow2.f32 %v2373_v44 }
 0x5ef   : > { %v2942_v20 = vpop.eup %2941 }
 0x5f0   : > { %2897 = vmatpush3.msra.mxu1 %v2942_v20  ;;  %v2375_v47 = vrot.slane %v2942_v20, 4 }
 0x5f2   : > { %v2376_v48 = vadd.f32 %v2942_v20, %v2375_v47 }
 0x5f4   : > { %v2377_v50 = vrot.slane %v2376_v48, 2 }
 0x5f6   : > { %v2378_v51 = vadd.f32 %v2377_v50, %v2376_v48 }
 0x5f8   : > { %v2379_v52 = vrot.slane %v2378_v51, 1 }
 0x5fa   : > { %v2380_v22 = vadd.f32 %v2379_v52, %v2378_v51 }
 0x5fc   : > { %2943 = vrcp.f32 %v2380_v22 }
 0x609   : > { %v2944_v53 = vpop.eup %2943 }
 0x695   : > { %v2450_v45 = vpop.f32.mrf.mxu0 }
 0x696   : > { %2899 = vmatmul.mubr.msk.f32.vlgmr.msra.gmra.mxu1 %vm862_vm5, %v2450_v45 }
 0x697   : > { %v2895_v46 = vpop.f32.mrf.mxu0 }
 0x756   : > { %v2523_v54 = vpop.f32.mrf.mxu1 }
 0x757   : > { %v2528_v55 = vmul.f32 %v2944_v53, %v2523_v54 }
 0x758   : > { %v2900_v56 = vpop.f32.mrf.mxu1 }
 0x759   : > { %v2529_v57 = vadd.f32 %v2528_v55, %v2002_v27  ;;  %2539 = sbr.rel (!%p3047_p5) target bundleno = 1894 (0x766), region = 97 }
 0x75b   : > { %v2530_v58 = vadd.f32 %v2529_v57, %v3271_v49 }
 0x75d   : > { %2700 = vst [vmem:[%s3276_s18 + $0x8] sm:$0xff] %v2530_v58 }
 0x764   : > { %v2574_v60 = vld [vmem:[%s3276_s18 + $0x8] sm:$0xff] }
 0x765   : > { %2575 = vst [vmem:[%s2541_s11 + $0x10] sm:$0xff] %v2574_v60 }
 0x766 PF: > { %p15_p10 = scmp.ge.s32.totalorder %s3034_s9, 4   ;;  %s3368_s27 = smov %s2963_s28 }
 0x767   : > { %s3369_s28 = smov %s3045_s12  ;;  %s3370_s29 = smov %s3034_s9 }
 0x768   :  { %17 = sbr.rel (!%p15_p10) target bundleno = 2 (0x2), region = 167 }

</bundles_post_ra>
